<compile_context>
chip_gen: v7x
topology: tpu7x:2x2x1
jax: 0.10.0
libtpu: 0.0.40
codegen_flags: <defaults>
</compile_context>

<pallas_src>
import jax
import jax.numpy as jnp
from jax.experimental import pallas as pl
from jax.experimental.pallas import tpu as pltpu


def attention_kernel(enc_ref, hid_ref,
                     w_enc_ref, b_enc_ref,
                     w_hid_ref, b_hid_ref,
                     w_full_ref, b_full_ref,
                     ctx_ref, alpha_ref):
    bt, n, f = enc_ref.shape
    a = w_enc_ref.shape[1]

    enc = enc_ref[...]                                     # (BT, N, F) bf16
    hid = hid_ref[...]                                     # (BT, H)    bf16

    # attn1 = encoder_attn(encoder_out): one (BT*N, F) x (F, A) MXU matmul
    # (bf16 operands, f32 accumulation), bias added in f32.
    attn1 = jnp.dot(enc.reshape(bt * n, f), w_enc_ref[...],
                    preferred_element_type=jnp.float32) + b_enc_ref[...]
    # attn2 = hidden_attn(hidden): (BT, H) x (H, A) on the MXU.
    attn2 = jnp.dot(hid, w_hid_ref[...],
                    preferred_element_type=jnp.float32) + b_hid_ref[...]
    # relu(attn1 + attn2.unsqueeze(1)) -> (BT, N, A), f32 on the VPU.
    attn = jnp.maximum(attn1.reshape(bt, n, a) + attn2[:, None, :], 0.0)

    # full_attn(attn): 1-output-column matmul would waste the MXU, so do a
    # VPU broadcast-multiply by w_full + lane reduce over A.  Scores come out
    # lane-dense on N directly (no (BT*N,1)->(BT,N) relayout).
    scores = jnp.sum(attn * w_full_ref[...], axis=-1) + b_full_ref[0, 0]

    # Softmax over N (lane-axis reductions); EUP approximate reciprocal.
    m = jnp.max(scores, axis=-1, keepdims=True)            # (BT, 1)
    e = jnp.exp(scores - m)                                 # (BT, N)
    denom = jnp.sum(e, axis=-1, keepdims=True)              # (BT, 1)
    alpha = e * pl.reciprocal(denom, approx=True)           # (BT, N) f32
    alpha_ref[...] = alpha.astype(alpha_ref.dtype)

    # context = sum_n alpha * encoder_out: per-batch 1-row matvecs under-fill
    # the MXU, so do a VPU multiply (f32 promote of bf16 enc) + sublane reduce.
    ctx = jnp.sum(alpha[:, :, None] * enc, axis=1)           # (BT, F) f32
    ctx_ref[...] = ctx.astype(ctx_ref.dtype)


def _pick_batch_tile(B, N, F, A, budget_bytes):
    """Largest batch tile whose full per-step working set fits the budget."""
    per_b = (2 * N * F * 2            # bf16 encoder block, double-buffered
             + N * A * 4              # f32 attn1/attn intermediate
             + N * F * 4              # f32 alpha*enc product before the reduce
             + 2 * (F + N + A) * 4)   # outputs + small rows, double-buffered
    fit = max(1, budget_bytes // per_b)
    if B >= 16:
        # Keep at least 2 grid steps so v7x's two TensorCores both get work.
        fit = min(fit, B // 2)
    if fit >= B:
        return B
    bt = max(8, (fit // 8) * 8)       # non-full batch blocks must be 8-aligned
    return min(bt, B)


def attention_pallas(encoder_out, hidden, params):
    B, N, F = encoder_out.shape
    H = hidden.shape[1]
    A = params["w_enc"].shape[1]

    # Hardware-aware VMEM budget: v7x has 64 MiB/TC, v5e/v6e 128 MiB, but the
    # scoped default is only 16/32 MiB -> request the limit explicitly.
    try:
        vmem_cap = pltpu.get_tpu_info().vmem_capacity_bytes
    except Exception:
        vmem_cap = 64 << 20           # conservative (v7x per-core) fallback
    vmem_limit = int(vmem_cap * 3 // 4)          # leave compiler headroom
    b_tile = _pick_batch_tile(B, N, F, A, vmem_limit // 2)

    # Pad the batch so b_tile divides it exactly; padded rows are sliced off.
    grid_b = pl.cdiv(B, b_tile)
    b_pad = grid_b * b_tile
    if b_pad != B:
        encoder_out = jnp.pad(encoder_out, ((0, b_pad - B), (0, 0), (0, 0)))
        hidden = jnp.pad(hidden, ((0, b_pad - B), (0, 0)))

    # bf16 feeds for the bandwidth-dominant / MXU operands.
    enc_bf16 = encoder_out.astype(jnp.bfloat16)
    hid_bf16 = hidden.astype(jnp.bfloat16)
    w_enc = params["w_enc"].astype(jnp.bfloat16)
    w_hid = params["w_hid"].astype(jnp.bfloat16)
    # w_full stays f32 and is pre-laid-out lane-dense (1, A) for the VPU path.
    w_full = params["w_full"].reshape(1, A).astype(jnp.float32)

    out_shapes = (jax.ShapeDtypeStruct((b_pad, F), jnp.float32),
                  jax.ShapeDtypeStruct((b_pad, N), jnp.float32))

    def call(single_buffer_weights):
        def const_spec(shape):
            idx = lambda b: (0,) * len(shape)
            if single_buffer_weights:
                # Grid-invariant operand: double-buffering only wastes VMEM.
                return pl.BlockSpec(shape, idx, pipeline_mode=pl.Buffered(1))
            return pl.BlockSpec(shape, idx)

        return pl.pallas_call(
            attention_kernel,
            out_shape=out_shapes,
            grid=(grid_b,),
            in_specs=[
                pl.BlockSpec((b_tile, N, F), lambda b: (b, 0, 0)),   # encoder_out
                pl.BlockSpec((b_tile, H),    lambda b: (b, 0)),      # hidden
                const_spec((F, A)),                                  # W_enc
                const_spec((1, A)),                                  # b_enc
                const_spec((H, A)),                                  # W_hid
                const_spec((1, A)),                                  # b_hid
                const_spec((1, A)),                                  # W_full row
                pl.BlockSpec(memory_space=pltpu.MemorySpace.SMEM),   # b_full
            ],
            out_specs=(
                pl.BlockSpec((b_tile, F), lambda b: (b, 0)),         # context
                pl.BlockSpec((b_tile, N), lambda b: (b, 0)),         # alpha
            ),
            compiler_params=pltpu.CompilerParams(
                dimension_semantics=("parallel",),
                vmem_limit_bytes=vmem_limit),
        )(enc_bf16, hid_bf16,
          w_enc, params["b_enc"], w_hid, params["b_hid"],
          w_full, params["b_full"])

    try:
        context, alpha = call(single_buffer_weights=True)
    except Exception:
        # Fallback for jax versions without BlockSpec.pipeline_mode support.
        context, alpha = call(single_buffer_weights=False)

    if b_pad != B:
        context, alpha = context[:B], alpha[:B]
    return context, alpha


def attention_reference(encoder_out, hidden, p):
    attn1 = encoder_out @ p["w_enc"] + p["b_enc"][0]
    attn2 = (hidden @ p["w_hid"] + p["b_hid"][0])[:, None, :]
    attn = jnp.maximum(attn1 + attn2, 0.0)
    out = (attn @ p["w_full"])[..., 0] + p["b_full"][0, 0]
    alpha = jax.nn.softmax(out, axis=1)
    context = (encoder_out * alpha[..., None]).sum(axis=1)
    return context, alpha


if __name__ == "__main__":
    # Small shapes consistent with the forward pass.
    B, N = 2, 8            # batch, number of encoder positions
    FEATURE_DIM = 32
    HIDDEN_DIM = 16
    ATTN_DIM = 64

    key = jax.random.PRNGKey(0)
    k_enc, k_hid, k1, k2, k3, k4, k5, k6 = jax.random.split(key, 8)

    encoder_out = jax.random.normal(k_enc, (B, N, FEATURE_DIM), jnp.float32)
    hidden = jax.random.normal(k_hid, (B, HIDDEN_DIM), jnp.float32)

    # Parameters stored pre-transposed as (in, out) so the kernel does
    # x @ W + b (equivalent to torch's x @ W.T + b with W=(out, in)).
    params = {
        "w_enc":  0.1 * jax.random.normal(k1, (FEATURE_DIM, ATTN_DIM), jnp.float32),
        "b_enc":  0.1 * jax.random.normal(k2, (1, ATTN_DIM), jnp.float32),
        "w_hid":  0.1 * jax.random.normal(k3, (HIDDEN_DIM, ATTN_DIM), jnp.float32),
        "b_hid":  0.1 * jax.random.normal(k4, (1, ATTN_DIM), jnp.float32),
        "w_full": 0.1 * jax.random.normal(k5, (ATTN_DIM, 1), jnp.float32),
        "b_full": 0.1 * jax.random.normal(k6, (1, 1), jnp.float32),
    }

    context, alpha = jax.block_until_ready(
        attention_pallas(encoder_out, hidden, params))

    ctx_ref, alpha_ref = attention_reference(encoder_out, hidden, params)
    # bf16 inputs/MXU matmuls + approx reciprocal -> relaxed tolerances.
    assert jnp.allclose(context, ctx_ref, atol=2e-2, rtol=2e-2)
    assert jnp.allclose(alpha, alpha_ref, atol=2e-2, rtol=2e-2)
    assert jnp.allclose(alpha.sum(axis=1), 1.0, atol=1e-2)

    print("KERNEL_OK")
</pallas_src>

<mosaic_0001>
module attributes {stable_mosaic.version = 11 : i64} {
  func.func @attention_kernel(%arg0: i32, %arg1: memref<2x8x32xbf16, #tpu.memory_space<vmem>>, %arg2: memref<2x16xbf16, #tpu.memory_space<vmem>>, %arg3: memref<32x64xbf16, #tpu.memory_space<vmem>>, %arg4: memref<1x64xf32, #tpu.memory_space<vmem>>, %arg5: memref<16x64xbf16, #tpu.memory_space<vmem>>, %arg6: memref<1x64xf32, #tpu.memory_space<vmem>>, %arg7: memref<1x64xf32, #tpu.memory_space<vmem>>, %arg8: memref<1x1xf32, #tpu.memory_space<smem>>, %arg9: memref<2x32xf32, #tpu.memory_space<vmem>>, %arg10: memref<2x8xf32, #tpu.memory_space<vmem>>) attributes {dimension_semantics = [#tpu.dimension_semantics<parallel>], iteration_bounds = array<i64: 1>, scalar_prefetch = 0 : i64, scratch_operands = 0 : i64, tpu.core_type = #tpu.core_type<tc>, window_params = [{transform_indices = @transform_0, window_bounds = array<i64: 2, 8, 32>}, {transform_indices = @transform_1, window_bounds = array<i64: 2, 16>}, {pipeline_mode = #tpu.pipeline_mode<synchronous>, transform_indices = @transform_2, window_bounds = array<i64: 32, 64>}, {pipeline_mode = #tpu.pipeline_mode<synchronous>, transform_indices = @transform_3, window_bounds = array<i64: 1, 64>}, {pipeline_mode = #tpu.pipeline_mode<synchronous>, transform_indices = @transform_4, window_bounds = array<i64: 16, 64>}, {pipeline_mode = #tpu.pipeline_mode<synchronous>, transform_indices = @transform_5, window_bounds = array<i64: 1, 64>}, {pipeline_mode = #tpu.pipeline_mode<synchronous>, transform_indices = @transform_6, window_bounds = array<i64: 1, 64>}, {transform_indices = @transform_7, window_bounds = array<i64: 1, 1>}, {transform_indices = @transform_8, window_bounds = array<i64: 2, 32>}, {transform_indices = @transform_9, window_bounds = array<i64: 2, 8>}]} {
    %c0 = arith.constant 0 : index
    %c0_0 = arith.constant 0 : index
    %c0_1 = arith.constant 0 : index
    %0 = vector.load %arg1[%c0, %c0_0, %c0_1] : memref<2x8x32xbf16, #tpu.memory_space<vmem>>, vector<2x8x32xbf16>
    %c0_2 = arith.constant 0 : index
    %c0_3 = arith.constant 0 : index
    %1 = vector.load %arg2[%c0_2, %c0_3] : memref<2x16xbf16, #tpu.memory_space<vmem>>, vector<2x16xbf16>
    %2 = vector.shape_cast %0 : vector<2x8x32xbf16> to vector<16x32xbf16>
    %c0_4 = arith.constant 0 : index
    %c0_5 = arith.constant 0 : index
    %3 = vector.load %arg3[%c0_4, %c0_5] : memref<32x64xbf16, #tpu.memory_space<vmem>>, vector<32x64xbf16>
    %cst = arith.constant dense<0.000000e+00> : vector<16x64xf32>
    %4 = tpu.matmul %2, %3, %cst {dimension_numbers = #tpu.dot_dimension_numbers<[1], [0], [0], [1], [0, 0, 1, 1], [], []>} : vector<16x32xbf16>, vector<32x64xbf16>, vector<16x64xf32> -> vector<16x64xf32>
    %c0_6 = arith.constant 0 : index
    %c0_7 = arith.constant 0 : index
    %5 = vector.load %arg4[%c0_6, %c0_7] : memref<1x64xf32, #tpu.memory_space<vmem>>, vector<1x64xf32>
    %6 = vector.broadcast %5 : vector<1x64xf32> to vector<16x64xf32>
    %7 = arith.addf %4, %6 : vector<16x64xf32>
    %c0_8 = arith.constant 0 : index
    %c0_9 = arith.constant 0 : index
    %8 = vector.load %arg5[%c0_8, %c0_9] : memref<16x64xbf16, #tpu.memory_space<vmem>>, vector<16x64xbf16>
    %cst_10 = arith.constant dense<0.000000e+00> : vector<2x64xf32>
    %9 = tpu.matmul %1, %8, %cst_10 {dimension_numbers = #tpu.dot_dimension_numbers<[1], [0], [0], [1], [0, 0, 1, 1], [], []>} : vector<2x16xbf16>, vector<16x64xbf16>, vector<2x64xf32> -> vector<2x64xf32>
    %c0_11 = arith.constant 0 : index
    %c0_12 = arith.constant 0 : index
    %10 = vector.load %arg6[%c0_11, %c0_12] : memref<1x64xf32, #tpu.memory_space<vmem>>, vector<1x64xf32>
    %11 = vector.broadcast %10 : vector<1x64xf32> to vector<2x64xf32>
    %12 = arith.addf %9, %11 : vector<2x64xf32>
    %13 = vector.shape_cast %7 : vector<16x64xf32> to vector<2x8x64xf32>
    %14 = vector.shape_cast %12 : vector<2x64xf32> to vector<2x1x64xf32>
    %15 = vector.broadcast %14 : vector<2x1x64xf32> to vector<2x8x64xf32>
    %16 = arith.addf %13, %15 : vector<2x8x64xf32>
    %cst_13 = arith.constant 0.000000e+00 : f32
    %17 = vector.broadcast %cst_13 : f32 to vector<2x8x64xf32>
    %18 = arith.maximumf %16, %17 : vector<2x8x64xf32>
    %c0_14 = arith.constant 0 : index
    %c0_15 = arith.constant 0 : index
    %19 = vector.load %arg7[%c0_14, %c0_15] : memref<1x64xf32, #tpu.memory_space<vmem>>, vector<1x64xf32>
    %20 = vector.shape_cast %19 : vector<1x64xf32> to vector<1x1x64xf32>
    %21 = vector.broadcast %20 : vector<1x1x64xf32> to vector<2x8x64xf32>
    %22 = arith.mulf %18, %21 : vector<2x8x64xf32>
    %cst_16 = arith.constant dense<0.000000e+00> : vector<2x8xf32>
    %23 = vector.multi_reduction <add>, %22, %cst_16 [2] : vector<2x8x64xf32> to vector<2x8xf32>
    %c0_17 = arith.constant 0 : index
    %c0_18 = arith.constant 0 : index
    %24 = memref.load %arg8[%c0_17, %c0_18] : memref<1x1xf32, #tpu.memory_space<smem>>
    %25 = vector.broadcast %24 : f32 to vector<2x8xf32>
    %26 = arith.addf %23, %25 : vector<2x8xf32>
    %cst_19 = arith.constant dense<0xFF800000> : vector<2xf32>
    %27 = vector.multi_reduction <maximumf>, %26, %cst_19 [1] : vector<2x8xf32> to vector<2xf32>
    %28 = vector.shape_cast %27 : vector<2xf32> to vector<2x1xf32>
    %29 = vector.broadcast %28 : vector<2x1xf32> to vector<2x8xf32>
    %30 = arith.subf %26, %29 : vector<2x8xf32>
    %31 = math.exp %30 : vector<2x8xf32>
    %cst_20 = arith.constant dense<0.000000e+00> : vector<2xf32>
    %32 = vector.multi_reduction <add>, %31, %cst_20 [1] : vector<2x8xf32> to vector<2xf32>
    %33 = vector.shape_cast %32 : vector<2xf32> to vector<2x1xf32>
    %34 = tpu.reciprocal %33 {approx = true} : vector<2x1xf32> -> vector<2x1xf32>
    %35 = vector.broadcast %34 : vector<2x1xf32> to vector<2x8xf32>
    %36 = arith.mulf %31, %35 : vector<2x8xf32>
    %c0_21 = arith.constant 0 : index
    %c0_22 = arith.constant 0 : index
    %37 = vector.load %arg10[%c0_21, %c0_22] : memref<2x8xf32, #tpu.memory_space<vmem>>, vector<2x8xf32>
    tpu.vector_store %arg10[%c0_21, %c0_22], %36 {strides = array<i32>} : memref<2x8xf32, #tpu.memory_space<vmem>>, vector<2x8xf32>,
    %38 = vector.shape_cast %36 : vector<2x8xf32> to vector<2x8x1xf32>
    %39 = arith.extf %0 : vector<2x8x32xbf16> to vector<2x8x32xf32>
    %40 = vector.broadcast %38 : vector<2x8x1xf32> to vector<2x8x32xf32>
    %41 = arith.mulf %40, %39 : vector<2x8x32xf32>
    %cst_23 = arith.constant dense<0.000000e+00> : vector<2x32xf32>
    %42 = vector.multi_reduction <add>, %41, %cst_23 [1] : vector<2x8x32xf32> to vector<2x32xf32>
    %c0_24 = arith.constant 0 : index
    %c0_25 = arith.constant 0 : index
    %43 = vector.load %arg9[%c0_24, %c0_25] : memref<2x32xf32, #tpu.memory_space<vmem>>, vector<2x32xf32>
    tpu.vector_store %arg9[%c0_24, %c0_25], %42 {strides = array<i32>} : memref<2x32xf32, #tpu.memory_space<vmem>>, vector<2x32xf32>,
    return
  }
  func.func @transform_0(%arg0: i32) -> (i32, i32, i32) {
    %c0_i32 = arith.constant 0 : i32
    %c0_i32_0 = arith.constant 0 : i32
    %c0_i32_1 = arith.constant 0 : i32
    return %arg0, %c0_i32, %c0_i32_0 : i32, i32, i32
  }
  func.func @transform_1(%arg0: i32) -> (i32, i32) {
    %c0_i32 = arith.constant 0 : i32
    %c0_i32_0 = arith.constant 0 : i32
    return %arg0, %c0_i32 : i32, i32
  }
  func.func @transform_2(%arg0: i32) -> (i32, i32) {
    %c0_i32 = arith.constant 0 : i32
    %c0_i32_0 = arith.constant 0 : i32
    %c0_i32_1 = arith.constant 0 : i32
    return %c0_i32, %c0_i32_0 : i32, i32
  }
  func.func @transform_3(%arg0: i32) -> (i32, i32) {
    %c0_i32 = arith.constant 0 : i32
    %c0_i32_0 = arith.constant 0 : i32
    %c0_i32_1 = arith.constant 0 : i32
    return %c0_i32, %c0_i32_0 : i32, i32
  }
  func.func @transform_4(%arg0: i32) -> (i32, i32) {
    %c0_i32 = arith.constant 0 : i32
    %c0_i32_0 = arith.constant 0 : i32
    %c0_i32_1 = arith.constant 0 : i32
    return %c0_i32, %c0_i32_0 : i32, i32
  }
  func.func @transform_5(%arg0: i32) -> (i32, i32) {
    %c0_i32 = arith.constant 0 : i32
    %c0_i32_0 = arith.constant 0 : i32
    %c0_i32_1 = arith.constant 0 : i32
    return %c0_i32, %c0_i32_0 : i32, i32
  }
  func.func @transform_6(%arg0: i32) -> (i32, i32) {
    %c0_i32 = arith.constant 0 : i32
    %c0_i32_0 = arith.constant 0 : i32
    %c0_i32_1 = arith.constant 0 : i32
    return %c0_i32, %c0_i32_0 : i32, i32
  }
  func.func @transform_7(%arg0: i32) -> (i32, i32) {
    %c0_i32 = arith.constant 0 : i32
    %c0_i32_0 = arith.constant 0 : i32
    %c0_i32_1 = arith.constant 0 : i32
    return %c0_i32, %c0_i32_0 : i32, i32
  }
  func.func @transform_8(%arg0: i32) -> (i32, i32) {
    %c0_i32 = arith.constant 0 : i32
    %c0_i32_0 = arith.constant 0 : i32
    return %arg0, %c0_i32 : i32, i32
  }
  func.func @transform_9(%arg0: i32) -> (i32, i32) {
    %c0_i32 = arith.constant 0 : i32
    %c0_i32_0 = arith.constant 0 : i32
    return %arg0, %c0_i32 : i32, i32
  }
}

module attributes {stable_mosaic.version = 11 : i64} {
  func.func @attention_kernel(%arg0: i32, %arg1: memref<2x8x32xbf16, #tpu.memory_space<vmem>>, %arg2: memref<2x16xbf16, #tpu.memory_space<vmem>>, %arg3: memref<32x64xbf16, #tpu.memory_space<vmem>>, %arg4: memref<1x64xf32, #tpu.memory_space<vmem>>, %arg5: memref<16x64xbf16, #tpu.memory_space<vmem>>, %arg6: memref<1x64xf32, #tpu.memory_space<vmem>>, %arg7: memref<1x64xf32, #tpu.memory_space<vmem>>, %arg8: memref<1x1xf32, #tpu.memory_space<smem>>, %arg9: memref<2x32xf32, #tpu.memory_space<vmem>>, %arg10: memref<2x8xf32, #tpu.memory_space<vmem>>) attributes {dimension_semantics = [#tpu.dimension_semantics<parallel>], iteration_bounds = array<i64: 1>, scalar_prefetch = 0 : i64, scratch_operands = 0 : i64, tpu.core_type = #tpu.core_type<tc>, window_params = [{transform_indices = @transform_0, window_bounds = array<i64: 2, 8, 32>}, {transform_indices = @transform_1, window_bounds = array<i64: 2, 16>}, {pipeline_mode = #tpu.pipeline_mode<synchronous>, transform_indices = @transform_2, window_bounds = array<i64: 32, 64>}, {pipeline_mode = #tpu.pipeline_mode<synchronous>, transform_indices = @transform_3, window_bounds = array<i64: 1, 64>}, {pipeline_mode = #tpu.pipeline_mode<synchronous>, transform_indices = @transform_4, window_bounds = array<i64: 16, 64>}, {pipeline_mode = #tpu.pipeline_mode<synchronous>, transform_indices = @transform_5, window_bounds = array<i64: 1, 64>}, {pipeline_mode = #tpu.pipeline_mode<synchronous>, transform_indices = @transform_6, window_bounds = array<i64: 1, 64>}, {transform_indices = @transform_7, window_bounds = array<i64: 1, 1>}, {transform_indices = @transform_8, window_bounds = array<i64: 2, 32>}, {transform_indices = @transform_9, window_bounds = array<i64: 2, 8>}]} {
    %c0 = arith.constant 0 : index
    %c0_0 = arith.constant 0 : index
    %c0_1 = arith.constant 0 : index
    %0 = vector.load %arg1[%c0, %c0_0, %c0_1] : memref<2x8x32xbf16, #tpu.memory_space<vmem>>, vector<2x8x32xbf16>
    %c0_2 = arith.constant 0 : index
    %c0_3 = arith.constant 0 : index
    %1 = vector.load %arg2[%c0_2, %c0_3] : memref<2x16xbf16, #tpu.memory_space<vmem>>, vector<2x16xbf16>
    %2 = vector.shape_cast %0 : vector<2x8x32xbf16> to vector<16x32xbf16>
    %c0_4 = arith.constant 0 : index
    %c0_5 = arith.constant 0 : index
    %3 = vector.load %arg3[%c0_4, %c0_5] : memref<32x64xbf16, #tpu.memory_space<vmem>>, vector<32x64xbf16>
    %cst = arith.constant dense<0.000000e+00> : vector<16x64xf32>
    %4 = tpu.matmul %2, %3, %cst {dimension_numbers = #tpu.dot_dimension_numbers<[1], [0], [0], [1], [0, 0, 1, 1], [], []>} : vector<16x32xbf16>, vector<32x64xbf16>, vector<16x64xf32> -> vector<16x64xf32>
    %c0_6 = arith.constant 0 : index
    %c0_7 = arith.constant 0 : index
    %5 = vector.load %arg4[%c0_6, %c0_7] : memref<1x64xf32, #tpu.memory_space<vmem>>, vector<1x64xf32>
    %6 = vector.broadcast %5 : vector<1x64xf32> to vector<16x64xf32>
    %7 = arith.addf %4, %6 : vector<16x64xf32>
    %c0_8 = arith.constant 0 : index
    %c0_9 = arith.constant 0 : index
    %8 = vector.load %arg5[%c0_8, %c0_9] : memref<16x64xbf16, #tpu.memory_space<vmem>>, vector<16x64xbf16>
    %cst_10 = arith.constant dense<0.000000e+00> : vector<2x64xf32>
    %9 = tpu.matmul %1, %8, %cst_10 {dimension_numbers = #tpu.dot_dimension_numbers<[1], [0], [0], [1], [0, 0, 1, 1], [], []>} : vector<2x16xbf16>, vector<16x64xbf16>, vector<2x64xf32> -> vector<2x64xf32>
    %c0_11 = arith.constant 0 : index
    %c0_12 = arith.constant 0 : index
    %10 = vector.load %arg6[%c0_11, %c0_12] : memref<1x64xf32, #tpu.memory_space<vmem>>, vector<1x64xf32>
    %11 = vector.broadcast %10 : vector<1x64xf32> to vector<2x64xf32>
    %12 = arith.addf %9, %11 : vector<2x64xf32>
    %13 = vector.shape_cast %7 : vector<16x64xf32> to vector<2x8x64xf32>
    %14 = vector.shape_cast %12 : vector<2x64xf32> to vector<2x1x64xf32>
    %15 = vector.broadcast %14 : vector<2x1x64xf32> to vector<2x8x64xf32>
    %16 = arith.addf %13, %15 : vector<2x8x64xf32>
    %cst_13 = arith.constant 0.000000e+00 : f32
    %17 = vector.broadcast %cst_13 : f32 to vector<2x8x64xf32>
    %18 = arith.maximumf %16, %17 : vector<2x8x64xf32>
    %c0_14 = arith.constant 0 : index
    %c0_15 = arith.constant 0 : index
    %19 = vector.load %arg7[%c0_14, %c0_15] : memref<1x64xf32, #tpu.memory_space<vmem>>, vector<1x64xf32>
    %20 = vector.shape_cast %19 : vector<1x64xf32> to vector<1x1x64xf32>
    %21 = vector.broadcast %20 : vector<1x1x64xf32> to vector<2x8x64xf32>
    %22 = arith.mulf %18, %21 : vector<2x8x64xf32>
    %cst_16 = arith.constant dense<0.000000e+00> : vector<2x8xf32>
    %23 = vector.multi_reduction <add>, %22, %cst_16 [2] : vector<2x8x64xf32> to vector<2x8xf32>
    %c0_17 = arith.constant 0 : index
    %c0_18 = arith.constant 0 : index
    %24 = memref.load %arg8[%c0_17, %c0_18] : memref<1x1xf32, #tpu.memory_space<smem>>
    %25 = vector.broadcast %24 : f32 to vector<2x8xf32>
    %26 = arith.addf %23, %25 : vector<2x8xf32>
    %cst_19 = arith.constant dense<0xFF800000> : vector<2xf32>
    %27 = vector.multi_reduction <maximumf>, %26, %cst_19 [1] : vector<2x8xf32> to vector<2xf32>
    %28 = vector.shape_cast %27 : vector<2xf32> to vector<2x1xf32>
    %29 = vector.broadcast %28 : vector<2x1xf32> to vector<2x8xf32>
    %30 = arith.subf %26, %29 : vector<2x8xf32>
    %31 = math.exp %30 : vector<2x8xf32>
    %cst_20 = arith.constant dense<0.000000e+00> : vector<2xf32>
    %32 = vector.multi_reduction <add>, %31, %cst_20 [1] : vector<2x8xf32> to vector<2xf32>
    %33 = vector.shape_cast %32 : vector<2xf32> to vector<2x1xf32>
    %34 = tpu.reciprocal %33 {approx = true} : vector<2x1xf32> -> vector<2x1xf32>
    %35 = vector.broadcast %34 : vector<2x1xf32> to vector<2x8xf32>
    %36 = arith.mulf %31, %35 : vector<2x8xf32>
    %c0_21 = arith.constant 0 : index
    %c0_22 = arith.constant 0 : index
    %37 = vector.load %arg10[%c0_21, %c0_22] : memref<2x8xf32, #tpu.memory_space<vmem>>, vector<2x8xf32>
    tpu.vector_store %arg10[%c0_21, %c0_22], %36 {strides = array<i32>} : memref<2x8xf32, #tpu.memory_space<vmem>>, vector<2x8xf32>,
    %38 = vector.shape_cast %36 : vector<2x8xf32> to vector<2x8x1xf32>
    %39 = arith.extf %0 : vector<2x8x32xbf16> to vector<2x8x32xf32>
    %40 = vector.broadcast %38 : vector<2x8x1xf32> to vector<2x8x32xf32>
    %41 = arith.mulf %40, %39 : vector<2x8x32xf32>
    %cst_23 = arith.constant dense<0.000000e+00> : vector<2x32xf32>
    %42 = vector.multi_reduction <add>, %41, %cst_23 [1] : vector<2x8x32xf32> to vector<2x32xf32>
    %c0_24 = arith.constant 0 : index
    %c0_25 = arith.constant 0 : index
    %43 = vector.load %arg9[%c0_24, %c0_25] : memref<2x32xf32, #tpu.memory_space<vmem>>, vector<2x32xf32>
    tpu.vector_store %arg9[%c0_24, %c0_25], %42 {strides = array<i32>} : memref<2x32xf32, #tpu.memory_space<vmem>>, vector<2x32xf32>,
    return
  }
  func.func @transform_0(%arg0: i32) -> (i32, i32, i32) {
    %c0_i32 = arith.constant 0 : i32
    %c0_i32_0 = arith.constant 0 : i32
    %c0_i32_1 = arith.constant 0 : i32
    return %arg0, %c0_i32, %c0_i32_0 : i32, i32, i32
  }
  func.func @transform_1(%arg0: i32) -> (i32, i32) {
    %c0_i32 = arith.constant 0 : i32
    %c0_i32_0 = arith.constant 0 : i32
    return %arg0, %c0_i32 : i32, i32
  }
  func.func @transform_2(%arg0: i32) -> (i32, i32) {
    %c0_i32 = arith.constant 0 : i32
    %c0_i32_0 = arith.constant 0 : i32
    %c0_i32_1 = arith.constant 0 : i32
    return %c0_i32, %c0_i32_0 : i32, i32
  }
  func.func @transform_3(%arg0: i32) -> (i32, i32) {
    %c0_i32 = arith.constant 0 : i32
    %c0_i32_0 = arith.constant 0 : i32
    %c0_i32_1 = arith.constant 0 : i32
    return %c0_i32, %c0_i32_0 : i32, i32
  }
  func.func @transform_4(%arg0: i32) -> (i32, i32) {
    %c0_i32 = arith.constant 0 : i32
    %c0_i32_0 = arith.constant 0 : i32
    %c0_i32_1 = arith.constant 0 : i32
    return %c0_i32, %c0_i32_0 : i32, i32
  }
  func.func @transform_5(%arg0: i32) -> (i32, i32) {
    %c0_i32 = arith.constant 0 : i32
    %c0_i32_0 = arith.constant 0 : i32
    %c0_i32_1 = arith.constant 0 : i32
    return %c0_i32, %c0_i32_0 : i32, i32
  }
  func.func @transform_6(%arg0: i32) -> (i32, i32) {
    %c0_i32 = arith.constant 0 : i32
    %c0_i32_0 = arith.constant 0 : i32
    %c0_i32_1 = arith.constant 0 : i32
    return %c0_i32, %c0_i32_0 : i32, i32
  }
  func.func @transform_7(%arg0: i32) -> (i32, i32) {
    %c0_i32 = arith.constant 0 : i32
    %c0_i32_0 = arith.constant 0 : i32
    %c0_i32_1 = arith.constant 0 : i32
    return %c0_i32, %c0_i32_0 : i32, i32
  }
  func.func @transform_8(%arg0: i32) -> (i32, i32) {
    %c0_i32 = arith.constant 0 : i32
    %c0_i32_0 = arith.constant 0 : i32
    return %arg0, %c0_i32 : i32, i32
  }
  func.func @transform_9(%arg0: i32) -> (i32, i32) {
    %c0_i32 = arith.constant 0 : i32
    %c0_i32_0 = arith.constant 0 : i32
    return %arg0, %c0_i32 : i32, i32
  }
}

</mosaic_0001>

<bundles_post_ra>
// kernel: tpu_custom_call.1
= control target key start
LH: loop header
LB: loop body
LE: loop exit
PB: predicated region body
PF: predicated region fallthrough
CT: control target
= control target key end

     0   :  { %16 = vsyncpa [#allocation4], 0  ;;  %s701_s0 = inlined_call_operand.hbm [shape: bf16[2,8,32], index: 0, kind: input, shape index: {}]   ;;  %s702_s1 = inlined_call_operand.vmem [shape: bf16[2,16], index: 1, kind: input, shape index: {}]   ;;  %s703_s2 = inlined_call_operand.hbm [shape: bf16[32,64], index: 2, kind: input, shape index: {}]   ;;  %s704_s3 = inlined_call_operand.vmem [shape: f32[1,64], index: 3, kind: input, shape index: {}]   ;;  %s705_s4 = inlined_call_operand.vmem [shape: bf16[16,64], index: 4, kind: input, shape index: {}]   ;;  %s706_s5 = inlined_call_operand.vmem [shape: f32[1,64], index: 5, kind: input, shape index: {}]   ;;  %s707_s6 = inlined_call_operand.vmem [shape: f32[1,64], index: 6, kind: input, shape index: {}]   ;;  %s708_s7 = inlined_call_operand.<no memory space> [shape: f32[1,1], index: 7, kind: input, shape index: {}]   ;;  %s709_s8 = inlined_call_operand.hbm [shape: f32[2,32], index: 8, kind: output, shape index: {0}]   ;;  %s710_s9 = inlined_call_operand.hbm [shape: f32[2,8], index: 9, kind: output, shape index: {1}]  }
   0x1   :  { %17 = vsyncpa [#allocation7], 0 }
   0x2   :  { %18 = vsyncpa [#allocation5], 0 }
   0x3   :  { %19 = vsyncpa [#allocation10], 0  ;;  %s548_s30 = smov [#allocation3]   ;;  %s452_s13 = scalar_lea.hbm %s701_s0, 128 }
   0x4   :  { %s25_s10 = sshll.u32 %s548_s30, 4  ;;  %p453_p0 = scmp.ne.s32.totalorder %s701_s0, %s452_s13  ;;  %s26_s10 = int_to_ptr.vmem [resolvable:$true] %s25_s10 }
   0x5   :  { %p456_p1 = scmp.lt.u32.totalorder %s452_s13, %s701_s0 }
   0x7   :  { %p458_p2 = pnand %p456_p1, %p453_p0 }
   0x9   :  { %461 = shalt.err (!%p458_p2)
}
   0xa   :  { %s462_s18 = scalar_lea.vmem %s26_s10, 128  ;;  %p467_p4 = scmp.lt.s32.totalorder %s26_s10, %s26_s10 }
   0xb   :  { %p463_p3 = scmp.ne.s32.totalorder %s26_s10, %s462_s18  ;;  %p468_p5 = scmp.lt.s32.totalorder %s462_s18, %s462_s18 }
   0xd   :  { %p469_p6 = por %p468_p5, %p467_p4 }
   0xf   :  { %p470_p7 = pnand %p469_p6, %p463_p3 }
  0x11   :  { %473 = shalt.err (!%p470_p7)
}
  0x12   :  { %s549_s19 = smov 64   ;;  %s550_s20 = smov 4  }
  0x13   :  { %31 = dma.hbm_to_vmem [thread:$0]  %s701_s0, 128, %s26_s10, [#allocation4], %s549_s19, %s549_s19, %s550_s20  }
  0x14   :  { %s551_s23 = smov [#allocation6]   ;;  %s474_s27 = scalar_lea.hbm %s703_s2, 256 }
  0x15   :  { %s39_s24 = sshll.u32 %s551_s23, 4  ;;  %p475_p8 = scmp.ne.s32.totalorder %s703_s2, %s474_s27  ;;  %s40_s24 = int_to_ptr.vmem [resolvable:$true] %s39_s24 }
  0x16   :  { %p478_p9 = scmp.lt.u32.totalorder %s474_s27, %s703_s2 }
  0x18   :  { %p480_p10 = pnand %p478_p9, %p475_p8 }
  0x1a   :  { %483 = shalt.err (!%p480_p10)
}
  0x1b   :  { %s484_s12 = scalar_lea.vmem %s40_s24, 256  ;;  %p489_p12 = scmp.lt.s32.totalorder %s40_s24, %s40_s24 }
  0x1c   :  { %p485_p11 = scmp.ne.s32.totalorder %s40_s24, %s484_s12  ;;  %p490_p13 = scmp.lt.s32.totalorder %s484_s12, %s484_s12 }
  0x1e   :  { %p491_p0 = por %p490_p13, %p489_p12 }
  0x20   :  { %p492_p1 = pnand %p491_p0, %p485_p11 }
  0x22   :  { %495 = shalt.err (!%p492_p1)
}
  0x23   :  { %45 = dma.hbm_to_vmem [thread:$0]  %s703_s2, 256, %s40_s24, [#allocation7], %s549_s19, %s549_s19, %s550_s20  }
  0x24   :  { %540 = dma.done.wait [#allocation4], 128  }
  0x25   :  { %541 = vsyncadd [#allocation4], 4294967168 }
  0x26   :  { %542 = dma.done.wait [#allocation7], 256  }
  0x27   :  { %543 = vsyncadd [#allocation7], 4294967040  ;;  %v552_v0 = vmov 0.0   ;;  %vm553_vm0 = vmmov 0   ;;  %v441_v1 = vld [vmem:[#allocation6] sm:$0xff]   ;;  %v442_v2 = vld [vmem:[%s705_s4] sm:$0xff]   ;;  %v202_v8 = vlaneseq  ;;  %v252_v42 = vstv %s708_s7 }
  0x28   :  { %415 = vmatprep.subr.bf16.mxu0 %v552_v0  ;;  %423 = vmatprep.subr.bf16.mxu1 %v552_v0  ;;  %v65_v3 = vld [vmem:[%s702_s1] sm:$0x1]  ;;  %vm154_vm1 = vcmask 130048   ;;  %v443_v4 = vld [vmem:[#allocation6 + $0x8] sm:$0xff]   ;;  %vm94_vm2 = vcmask 261120   ;;  %vm244_vm3 = vcmask 523264  }
  0x29   :  { %425 = vmatprep.mubr.msk.bf16.mxu1 %vm553_vm0, %v552_v0  ;;  %419 = vmatprep.mubr.msk.bf16.mxu0 %vm553_vm0, %v552_v0  ;;  %v638_v5 = vld [vmem:[#allocation3] sm:$0xff]   ;;  %v554_v6 = vmov 1966171168   ;;  %v642_v10 = vshrl.u32 %v202_v8, 7  ;;  %v258_v41 = vand.u32 127, %v202_v8  ;;  %vm267_vm4 = vcmask 1041409  }
  0x2a   :  { %416 = vmatpush3.bf16.msra.mxu0 %v441_v1  ;;  %424 = vmatpush3.bf16.msra.mxu1 %v442_v2  ;;  %v200_v7 = vunpack.c.l.s4 %v554_v6  ;;  %v406_v11 = vld [vmem:[%s706_s5] ss:$0 sm:$0xff]  ;;  %vm270_vm5 = vcmask 58368   ;;  %v555_v52 = vmov 0  }
  0x2b   :  { %417 = vmatprep.subr.bf16.mxu0 %v552_v0  ;;  %v401_v17 = vld [vmem:[%s704_s3] ss:$0 sm:$0xff]  ;;  %v652_v21 = vsub.s32 0, %v642_v10  ;;  %v261_v44 = vsub.s32 %v258_v41, %v642_v10  ;;  %440 = vset.pattern.permute.xlu0 %v555_v52  ;;  %v281_v53 = vsub.s32 1, %v642_v10 }
  0x2c   :  { %v201_v9 = vunpack.c.0.s8 %v200_v7  ;;  %v409_v33 = vld [vmem:[%s707_s6] ss:$0 sm:$0xff]  ;;  %439 = vset.pattern.permute.xlu1 %v555_v52  ;;  %s556_s6 = smov [#allocation9]  }
  0x2d   :  { %426 = vmatmul.mubr.msk.bf16.vlgmr.msra.gmra.mrb[0].mxu1 %vm154_vm1, %v65_v3  ;;  %s387_s7 = sshll.u32 %s556_s6, 4  ;;  %s388_s7 = int_to_ptr.vmem [resolvable:$true] %s387_s7 }
  0x2e   :  { %418 = vmatpush3.bf16.msra.mxu0 %v443_v4  ;;  %v204_v12 = vsub.s32 %v201_v9, %v642_v10  ;;  %s496_s20 = scalar_lea.vmem %s388_s7, 32  ;;  %p501_p3 = scmp.lt.s32.totalorder %s388_s7, %s388_s7 }
  0x2f   :  { %p497_p2 = scmp.ne.s32.totalorder %s388_s7, %s496_s20  ;;  %p502_p4 = scmp.lt.s32.totalorder %s496_s20, %s496_s20 }
  0x31   :  { %420 = vmatmul.mubr.msk.bf16.vlgmr.msra.gmra.mrb[0].mxu0 %vm94_vm2, %v638_v5  ;;  %p503_p5 = por %p502_p4, %p501_p3 }
  0x33   :  { %p504_p6 = pnand %p503_p5, %p497_p2 }
 0x100   :  { %v192_v13 = vpop.f32.mrb[0].mxu1 }
 0x101   :  { %v193_v14 = vadd.f32 %v406_v11, %v192_v13  ;;  %v427_v15 = vpop.f32.mrb[1].mxu1 }
 0x102   :  { %v195_v16 = vpop.f32.mrb[2].mxu1  ;;  %v346_v15 = vunpack.c.h.bf16 %v638_v5 }
 0x103   :  { %v205_v18 = vrot.slane %v193_v14, %v204_v12  ;;  %v428_v19 = vpop.f32.mrb[3].mxu1 }
 0x104   :  { %v132_v20 = vpop.f32.mrb[0].mxu0 }
 0x105   :  { %v421_v22 = vpop.f32.mrb[1].mxu0  ;;  %v206_v23 = vcombine.high %v205_v18, %v205_v18  ;;  %v213_v24 = vrot.slane %v205_v18, %v204_v12  ;;  %v133_v25 = vadd.f32 %v401_v17, %v132_v20 }
 0x106   :  { %v135_v26 = vpop.f32.mrb[2].mxu0 }
 0x107   :  { %v422_v27 = vpop.f32.mrb[3].mxu0  ;;  %v224_v28 = vrot.slane %v213_v24, %v652_v21  ;;  %v220_v29 = vrot.slane %v206_v23, %v204_v12  ;;  %v136_v31 = vadd.f32 %v401_v17, %v135_v26  ;;  %v345_v12 = vunpack.c.l.bf16 %v638_v5 }
 0x109   :  { %v231_v30 = vadd.f32 %v224_v28, %v133_v25  ;;  %v228_v32 = vrot.slane %v220_v29, %v652_v21 }
 0x10b   :  { %v233_v34 = vmax.f32 %v231_v30, 0.0  ;;  %v232_v35 = vadd.f32 %v228_v32, %v136_v31 }
 0x10d   :  { %v234_v36 = vmax.f32 %v232_v35, 0.0  ;;  %v242_v37 = vmul.f32 %v409_v33, %v233_v34 }
 0x10f   :  { %v245_v38 = vsel %vm244_vm3, %v242_v37, 0.0  ;;  %v243_v39 = vmul.f32 %v409_v33, %v234_v36 }
 0x110   :  { %246 = vadd.xlane.f32.xlu0 %v245_v38 }
 0x111   :  { %v248_v40 = vsel %vm244_vm3, %v243_v39, 0.0 }
 0x114   :  { %249 = vadd.xlane.f32.xlu0 %v248_v40 }
 0x19d   :  { %v247_v43 = vpop.xlane.xlu0 %246 }
 0x19e   :  { %v253_v45 = vadd.f32 %v252_v42, %v247_v43 }
 0x1a0   :  { %v262_v48 = vrot.slane %v253_v45, %v261_v44 }
 0x1a1   :  { %v250_v46 = vpop.xlane.xlu0 %249 }
 0x1a2   :  { %v254_v47 = vadd.f32 %v252_v42, %v250_v46 }
 0x1a4   :  { %v266_v49 = vrot.slane %v254_v47, %v261_v44 }
 0x1a6   :  { %v268_v50 = vsel %vm267_vm4, %v266_v49, %v262_v48 }
 0x1a7   :  { %v271_v51 = vsel %vm270_vm5, %v268_v50, -inf }
 0x1a8   :  { %272 = vmax.xlane.f32.xlu1 %v271_v51 }
 0x235   :  { %v273_v54 = vpop.xlane.xlu1 %272 }
 0x236   :  { %v278_v55 = vrot.slane %v273_v54, %v652_v21  ;;  %v282_v56 = vrot.slane %v273_v54, %v281_v53 }
 0x238   :  { %v285_v57 = vsub.f32 %v253_v45, %v278_v55  ;;  %v286_v58 = vsub.f32 %v254_v47, %v282_v56 }
 0x23a   :  { %v287_v59 = vmul.f32 1.442695, %v285_v57  ;;  %v289_v60 = vmul.f32 1.442695, %v286_v58 }
 0x23c   :  { %446 = vpow2.f32 %v287_v59 }
 0x23d   :  { %448 = vpow2.f32 %v289_v60 }
 0x246   :  { %v447_v61 = vpop.eup %446 }
 0x247   :  { %v449_v62 = vpop.eup %448  ;;  %294 = vperm.xlu1 %439, %v447_v61  }
 0x248   :  { %297 = vperm.xlu0 %440, %v449_v62  }
 0x2c6   :  { %v295_v63 = vpop.permute.xlu1 %294 }
 0x2c7   :  { %v298_v0 = vpop.permute.xlu0 %297  ;;  %v302_v1 = vrot.slane %v295_v63, %v261_v44 }
 0x2c8   :  { %v306_v2 = vrot.slane %v298_v0, %v261_v44 }
 0x2ca   :  { %v307_v3 = vsel %vm267_vm4, %v306_v2, %v302_v1 }
 0x2cb   :  { %v309_v4 = vsel %vm270_vm5, %v307_v3, 0.0 }
 0x2cc   :  { %310 = vadd.xlane.f32.xlu1 %v309_v4 }
 0x359   :  { %v311_v6 = vpop.xlane.xlu1 %310 }
 0x35a   :  { %450 = vrcp.f32 %v311_v6 }
 0x364   :  { %v451_v7 = vpop.eup %450 }
 0x365   :  { %v317_v8 = vrot.slane %v451_v7, %v652_v21  ;;  %v321_v10 = vrot.slane %v451_v7, %v281_v53 }
 0x367   :  { %v324_v9 = vmul.f32 %v447_v61, %v317_v8  ;;  %v325_v11 = vmul.f32 %v449_v62, %v321_v10 }
 0x369   :  { %329 = vperm.xlu0 %440, %v324_v9  }
 0x36d   :  { %332 = vperm.xlu0 %440, %v325_v11  }
 0x3e8   :  { %v330_v13 = vpop.permute.xlu0 %329 }
 0x3e9   :  { %v349_v14 = vmul.f32 %v345_v12, %v330_v13  ;;  %v337_v19 = vrot.slane %v330_v13, %v261_v44 }
 0x3eb   :  { %v351_v16 = vsel %vm94_vm2, %v349_v14, 0.0 }
 0x3ec   :  { %v352_v17 = vrot.slane %v351_v16, 4  ;;  %v333_v18 = vpop.permute.xlu0 %332 }
 0x3ed   :  { %v341_v20 = vrot.slane %v333_v18, %v261_v44  ;;  %v350_v21 = vmul.f32 %v346_v15, %v333_v18 }
 0x3ee   :  { %v353_v22 = vadd.f32 %v352_v17, %v351_v16 }
 0x3ef   :  { %v358_v23 = vsel %vm94_vm2, %v350_v21, 0.0  ;;  %v342_v24 = vsel %vm267_vm4, %v341_v20, %v337_v19 }
 0x3f0   :  { %v354_v25 = vrot.slane %v353_v22, 2  ;;  %v359_v26 = vrot.slane %v358_v23, 4  ;;  %344 = vst.msk [vmem:[#allocation9] sm:$0x3] %vm270_vm5, %v342_v24 }
 0x3f1   :  { %507 = shalt.err (!%p504_p6)
}
 0x3f2   :  { %s508_s23 = scalar_lea.hbm %s710_s9, 32 }
 0x3f3   :  { %p509_p7 = scmp.ne.s32.totalorder %s710_s9, %s508_s23  ;;  %p512_p8 = scmp.lt.u32.totalorder %s508_s23, %s710_s9 }
 0x3f5   :  { %p514_p9 = pnand %p512_p8, %p509_p7 }
 0x3f7   :  { %517 = shalt.err (!%p514_p9)
}
 0x3f8   :  { %390 = dma.vmem_to_hbm [thread:$0]  %s388_s7, 32, %s710_s9, [#allocation10]   ;;  %v355_v5 = vadd.f32 %v354_v25, %v353_v22  ;;  %v360_v27 = vadd.f32 %v359_v26, %v358_v23  ;;  %vm369_vm6 = vcmask 254976  }
 0x3f9   :  { %s557_s30 = smov [#allocation8]  }
 0x3fa   :  { %v361_v28 = vrot.slane %v360_v27, 2  ;;  %v356_v29 = vrot.slane %v355_v5, 1  ;;  %s377_s11 = sshll.u32 %s557_s30, 4  ;;  %s378_s11 = int_to_ptr.vmem [resolvable:$true] %s377_s11 }
 0x3fb   :  { %s518_s12 = scalar_lea.vmem %s378_s11, 32  ;;  %p523_p11 = scmp.lt.s32.totalorder %s378_s11, %s378_s11 }
 0x3fc   :  { %v362_v30 = vadd.f32 %v361_v28, %v360_v27  ;;  %v357_v33 = vadd.f32 %v356_v29, %v355_v5  ;;  %p519_p10 = scmp.ne.s32.totalorder %s378_s11, %s518_s12  ;;  %p524_p12 = scmp.lt.s32.totalorder %s518_s12, %s518_s12 }
 0x3fe   :  { %v363_v31 = vrot.slane %v362_v30, 1  ;;  %p525_p13 = por %p524_p12, %p523_p11 }
 0x400   :  { %v364_v32 = vadd.f32 %v363_v31, %v362_v30  ;;  %p526_p0 = pnand %p525_p13, %p519_p10 }
 0x402   :  { %v367_v34 = vsel %vm267_vm4, %v364_v32, %v357_v33 }
 0x403   :  { %370 = vst.msk [vmem:[#allocation8] sm:$0x3] %vm369_vm6, %v367_v34 }
 0x404   :  { %529 = shalt.err (!%p526_p0)
}
 0x405   :  { %s530_s10 = scalar_lea.hbm %s709_s8, 32 }
 0x406   :  { %p531_p1 = scmp.ne.s32.totalorder %s709_s8, %s530_s10  ;;  %p534_p2 = scmp.lt.u32.totalorder %s530_s10, %s709_s8 }
 0x408   :  { %p536_p3 = pnand %p534_p2, %p531_p1 }
 0x40a   :  { %539 = shalt.err (!%p536_p3)
}
 0x40b   :  { %380 = dma.vmem_to_hbm [thread:$0]  %s378_s11, 32, %s709_s8, [#allocation5]  }
 0x40c   :  { %544 = dma.done.wait [#allocation5], 32  }
 0x40d   :  { %545 = vsyncadd [#allocation5], 4294967264 }
 0x40e   :  { %546 = dma.done.wait [#allocation10], 32  }
 0x40f   :  { %547 = vsyncadd [#allocation10], 4294967264 }
 0x410   :  { %397 = vsyncpa [#allocation4], 1 }
 0x411   :  { %398 = vsyncpa [#allocation7], 1 }
 0x412   :  { %399 = vsyncpa [#allocation5], 1 }
 0x413   :  { %400 = vsyncpa [#allocation10], 1 }

// kernel: tpu_custom_call.1
= control target key start
LH: loop header
LB: loop body
LE: loop exit
PB: predicated region body
PF: predicated region fallthrough
CT: control target
= control target key end

     0   :  { %16 = vsyncpa [#allocation4], 0  ;;  %s701_s0 = inlined_call_operand.hbm [shape: bf16[2,8,32], index: 0, kind: input, shape index: {}]   ;;  %s702_s1 = inlined_call_operand.vmem [shape: bf16[2,16], index: 1, kind: input, shape index: {}]   ;;  %s703_s2 = inlined_call_operand.hbm [shape: bf16[32,64], index: 2, kind: input, shape index: {}]   ;;  %s704_s3 = inlined_call_operand.vmem [shape: f32[1,64], index: 3, kind: input, shape index: {}]   ;;  %s705_s4 = inlined_call_operand.vmem [shape: bf16[16,64], index: 4, kind: input, shape index: {}]   ;;  %s706_s5 = inlined_call_operand.vmem [shape: f32[1,64], index: 5, kind: input, shape index: {}]   ;;  %s707_s6 = inlined_call_operand.vmem [shape: f32[1,64], index: 6, kind: input, shape index: {}]   ;;  %s708_s7 = inlined_call_operand.<no memory space> [shape: f32[1,1], index: 7, kind: input, shape index: {}]   ;;  %s709_s8 = inlined_call_operand.hbm [shape: f32[2,32], index: 8, kind: output, shape index: {0}]   ;;  %s710_s9 = inlined_call_operand.hbm [shape: f32[2,8], index: 9, kind: output, shape index: {1}]  }
   0x1   :  { %17 = vsyncpa [#allocation7], 0 }
   0x2   :  { %18 = vsyncpa [#allocation5], 0 }
   0x3   :  { %19 = vsyncpa [#allocation10], 0  ;;  %s548_s30 = smov [#allocation3]   ;;  %s452_s13 = scalar_lea.hbm %s701_s0, 128 }
   0x4   :  { %s25_s10 = sshll.u32 %s548_s30, 4  ;;  %p453_p0 = scmp.ne.s32.totalorder %s701_s0, %s452_s13  ;;  %s26_s10 = int_to_ptr.vmem [resolvable:$true] %s25_s10 }
   0x5   :  { %p456_p1 = scmp.lt.u32.totalorder %s452_s13, %s701_s0 }
   0x7   :  { %p458_p2 = pnand %p456_p1, %p453_p0 }
   0x9   :  { %461 = shalt.err (!%p458_p2)
}
   0xa   :  { %s462_s18 = scalar_lea.vmem %s26_s10, 128  ;;  %p467_p4 = scmp.lt.s32.totalorder %s26_s10, %s26_s10 }
   0xb   :  { %p463_p3 = scmp.ne.s32.totalorder %s26_s10, %s462_s18  ;;  %p468_p5 = scmp.lt.s32.totalorder %s462_s18, %s462_s18 }
   0xd   :  { %p469_p6 = por %p468_p5, %p467_p4 }
   0xf   :  { %p470_p7 = pnand %p469_p6, %p463_p3 }
  0x11   :  { %473 = shalt.err (!%p470_p7)
}
  0x12   :  { %s549_s19 = smov 64   ;;  %s550_s20 = smov 4  }
  0x13   :  { %31 = dma.hbm_to_vmem [thread:$0]  %s701_s0, 128, %s26_s10, [#allocation4], %s549_s19, %s549_s19, %s550_s20  }
  0x14   :  { %s551_s23 = smov [#allocation6]   ;;  %s474_s27 = scalar_lea.hbm %s703_s2, 256 }
  0x15   :  { %s39_s24 = sshll.u32 %s551_s23, 4  ;;  %p475_p8 = scmp.ne.s32.totalorder %s703_s2, %s474_s27  ;;  %s40_s24 = int_to_ptr.vmem [resolvable:$true] %s39_s24 }
  0x16   :  { %p478_p9 = scmp.lt.u32.totalorder %s474_s27, %s703_s2 }
  0x18   :  { %p480_p10 = pnand %p478_p9, %p475_p8 }
  0x1a   :  { %483 = shalt.err (!%p480_p10)
}
  0x1b   :  { %s484_s12 = scalar_lea.vmem %s40_s24, 256  ;;  %p489_p12 = scmp.lt.s32.totalorder %s40_s24, %s40_s24 }
  0x1c   :  { %p485_p11 = scmp.ne.s32.totalorder %s40_s24, %s484_s12  ;;  %p490_p13 = scmp.lt.s32.totalorder %s484_s12, %s484_s12 }
  0x1e   :  { %p491_p0 = por %p490_p13, %p489_p12 }
  0x20   :  { %p492_p1 = pnand %p491_p0, %p485_p11 }
  0x22   :  { %495 = shalt.err (!%p492_p1)
}
  0x23   :  { %45 = dma.hbm_to_vmem [thread:$0]  %s703_s2, 256, %s40_s24, [#allocation7], %s549_s19, %s549_s19, %s550_s20  }
  0x24   :  { %540 = dma.done.wait [#allocation4], 128  }
  0x25   :  { %541 = vsyncadd [#allocation4], 4294967168 }
  0x26   :  { %542 = dma.done.wait [#allocation7], 256  }
  0x27   :  { %543 = vsyncadd [#allocation7], 4294967040  ;;  %v552_v0 = vmov 0.0   ;;  %vm553_vm0 = vmmov 0   ;;  %v441_v1 = vld [vmem:[#allocation6] sm:$0xff]   ;;  %v442_v2 = vld [vmem:[%s705_s4] sm:$0xff]   ;;  %v202_v8 = vlaneseq  ;;  %v252_v42 = vstv %s708_s7 }
  0x28   :  { %415 = vmatprep.subr.bf16.mxu0 %v552_v0  ;;  %423 = vmatprep.subr.bf16.mxu1 %v552_v0  ;;  %v65_v3 = vld [vmem:[%s702_s1] sm:$0x1]  ;;  %vm154_vm1 = vcmask 130048   ;;  %v443_v4 = vld [vmem:[#allocation6 + $0x8] sm:$0xff]   ;;  %vm94_vm2 = vcmask 261120   ;;  %vm244_vm3 = vcmask 523264  }
  0x29   :  { %425 = vmatprep.mubr.msk.bf16.mxu1 %vm553_vm0, %v552_v0  ;;  %419 = vmatprep.mubr.msk.bf16.mxu0 %vm553_vm0, %v552_v0  ;;  %v638_v5 = vld [vmem:[#allocation3] sm:$0xff]   ;;  %v554_v6 = vmov 1966171168   ;;  %v642_v10 = vshrl.u32 %v202_v8, 7  ;;  %v258_v41 = vand.u32 127, %v202_v8  ;;  %vm267_vm4 = vcmask 1041409  }
  0x2a   :  { %416 = vmatpush3.bf16.msra.mxu0 %v441_v1  ;;  %424 = vmatpush3.bf16.msra.mxu1 %v442_v2  ;;  %v200_v7 = vunpack.c.l.s4 %v554_v6  ;;  %v406_v11 = vld [vmem:[%s706_s5] ss:$0 sm:$0xff]  ;;  %vm270_vm5 = vcmask 58368   ;;  %v555_v52 = vmov 0  }
  0x2b   :  { %417 = vmatprep.subr.bf16.mxu0 %v552_v0  ;;  %v401_v17 = vld [vmem:[%s704_s3] ss:$0 sm:$0xff]  ;;  %v652_v21 = vsub.s32 0, %v642_v10  ;;  %v261_v44 = vsub.s32 %v258_v41, %v642_v10  ;;  %440 = vset.pattern.permute.xlu0 %v555_v52  ;;  %v281_v53 = vsub.s32 1, %v642_v10 }
  0x2c   :  { %v201_v9 = vunpack.c.0.s8 %v200_v7  ;;  %v409_v33 = vld [vmem:[%s707_s6] ss:$0 sm:$0xff]  ;;  %439 = vset.pattern.permute.xlu1 %v555_v52  ;;  %s556_s6 = smov [#allocation9]  }
  0x2d   :  { %426 = vmatmul.mubr.msk.bf16.vlgmr.msra.gmra.mrb[0].mxu1 %vm154_vm1, %v65_v3  ;;  %s387_s7 = sshll.u32 %s556_s6, 4  ;;  %s388_s7 = int_to_ptr.vmem [resolvable:$true] %s387_s7 }
  0x2e   :  { %418 = vmatpush3.bf16.msra.mxu0 %v443_v4  ;;  %v204_v12 = vsub.s32 %v201_v9, %v642_v10  ;;  %s496_s20 = scalar_lea.vmem %s388_s7, 32  ;;  %p501_p3 = scmp.lt.s32.totalorder %s388_s7, %s388_s7 }
  0x2f   :  { %p497_p2 = scmp.ne.s32.totalorder %s388_s7, %s496_s20  ;;  %p502_p4 = scmp.lt.s32.totalorder %s496_s20, %s496_s20 }
  0x31   :  { %420 = vmatmul.mubr.msk.bf16.vlgmr.msra.gmra.mrb[0].mxu0 %vm94_vm2, %v638_v5  ;;  %p503_p5 = por %p502_p4, %p501_p3 }
  0x33   :  { %p504_p6 = pnand %p503_p5, %p497_p2 }
 0x100   :  { %v192_v13 = vpop.f32.mrb[0].mxu1 }
 0x101   :  { %v193_v14 = vadd.f32 %v406_v11, %v192_v13  ;;  %v427_v15 = vpop.f32.mrb[1].mxu1 }
 0x102   :  { %v195_v16 = vpop.f32.mrb[2].mxu1  ;;  %v346_v15 = vunpack.c.h.bf16 %v638_v5 }
 0x103   :  { %v205_v18 = vrot.slane %v193_v14, %v204_v12  ;;  %v428_v19 = vpop.f32.mrb[3].mxu1 }
 0x104   :  { %v132_v20 = vpop.f32.mrb[0].mxu0 }
 0x105   :  { %v421_v22 = vpop.f32.mrb[1].mxu0  ;;  %v206_v23 = vcombine.high %v205_v18, %v205_v18  ;;  %v213_v24 = vrot.slane %v205_v18, %v204_v12  ;;  %v133_v25 = vadd.f32 %v401_v17, %v132_v20 }
 0x106   :  { %v135_v26 = vpop.f32.mrb[2].mxu0 }
 0x107   :  { %v422_v27 = vpop.f32.mrb[3].mxu0  ;;  %v224_v28 = vrot.slane %v213_v24, %v652_v21  ;;  %v220_v29 = vrot.slane %v206_v23, %v204_v12  ;;  %v136_v31 = vadd.f32 %v401_v17, %v135_v26  ;;  %v345_v12 = vunpack.c.l.bf16 %v638_v5 }
 0x109   :  { %v231_v30 = vadd.f32 %v224_v28, %v133_v25  ;;  %v228_v32 = vrot.slane %v220_v29, %v652_v21 }
 0x10b   :  { %v233_v34 = vmax.f32 %v231_v30, 0.0  ;;  %v232_v35 = vadd.f32 %v228_v32, %v136_v31 }
 0x10d   :  { %v234_v36 = vmax.f32 %v232_v35, 0.0  ;;  %v242_v37 = vmul.f32 %v409_v33, %v233_v34 }
 0x10f   :  { %v245_v38 = vsel %vm244_vm3, %v242_v37, 0.0  ;;  %v243_v39 = vmul.f32 %v409_v33, %v234_v36 }
 0x110   :  { %246 = vadd.xlane.f32.xlu0 %v245_v38 }
 0x111   :  { %v248_v40 = vsel %vm244_vm3, %v243_v39, 0.0 }
 0x114   :  { %249 = vadd.xlane.f32.xlu0 %v248_v40 }
 0x19d   :  { %v247_v43 = vpop.xlane.xlu0 %246 }
 0x19e   :  { %v253_v45 = vadd.f32 %v252_v42, %v247_v43 }
 0x1a0   :  { %v262_v48 = vrot.slane %v253_v45, %v261_v44 }
 0x1a1   :  { %v250_v46 = vpop.xlane.xlu0 %249 }
 0x1a2   :  { %v254_v47 = vadd.f32 %v252_v42, %v250_v46 }
 0x1a4   :  { %v266_v49 = vrot.slane %v254_v47, %v261_v44 }
 0x1a6   :  { %v268_v50 = vsel %vm267_vm4, %v266_v49, %v262_v48 }
 0x1a7   :  { %v271_v51 = vsel %vm270_vm5, %v268_v50, -inf }
 0x1a8   :  { %272 = vmax.xlane.f32.xlu1 %v271_v51 }
 0x235   :  { %v273_v54 = vpop.xlane.xlu1 %272 }
 0x236   :  { %v278_v55 = vrot.slane %v273_v54, %v652_v21  ;;  %v282_v56 = vrot.slane %v273_v54, %v281_v53 }
 0x238   :  { %v285_v57 = vsub.f32 %v253_v45, %v278_v55  ;;  %v286_v58 = vsub.f32 %v254_v47, %v282_v56 }
 0x23a   :  { %v287_v59 = vmul.f32 1.442695, %v285_v57  ;;  %v289_v60 = vmul.f32 1.442695, %v286_v58 }
 0x23c   :  { %446 = vpow2.f32 %v287_v59 }
 0x23d   :  { %448 = vpow2.f32 %v289_v60 }
 0x246   :  { %v447_v61 = vpop.eup %446 }
 0x247   :  { %v449_v62 = vpop.eup %448  ;;  %294 = vperm.xlu1 %439, %v447_v61  }
 0x248   :  { %297 = vperm.xlu0 %440, %v449_v62  }
 0x2c6   :  { %v295_v63 = vpop.permute.xlu1 %294 }
 0x2c7   :  { %v298_v0 = vpop.permute.xlu0 %297  ;;  %v302_v1 = vrot.slane %v295_v63, %v261_v44 }
 0x2c8   :  { %v306_v2 = vrot.slane %v298_v0, %v261_v44 }
 0x2ca   :  { %v307_v3 = vsel %vm267_vm4, %v306_v2, %v302_v1 }
 0x2cb   :  { %v309_v4 = vsel %vm270_vm5, %v307_v3, 0.0 }
 0x2cc   :  { %310 = vadd.xlane.f32.xlu1 %v309_v4 }
 0x359   :  { %v311_v6 = vpop.xlane.xlu1 %310 }
 0x35a   :  { %450 = vrcp.f32 %v311_v6 }
 0x364   :  { %v451_v7 = vpop.eup %450 }
 0x365   :  { %v317_v8 = vrot.slane %v451_v7, %v652_v21  ;;  %v321_v10 = vrot.slane %v451_v7, %v281_v53 }
 0x367   :  { %v324_v9 = vmul.f32 %v447_v61, %v317_v8  ;;  %v325_v11 = vmul.f32 %v449_v62, %v321_v10 }
 0x369   :  { %329 = vperm.xlu0 %440, %v324_v9  }
 0x36d   :  { %332 = vperm.xlu0 %440, %v325_v11  }
 0x3e8   :  { %v330_v13 = vpop.permute.xlu0 %329 }
 0x3e9   :  { %v349_v14 = vmul.f32 %v345_v12, %v330_v13  ;;  %v337_v19 = vrot.slane %v330_v13, %v261_v44 }
 0x3eb   :  { %v351_v16 = vsel %vm94_vm2, %v349_v14, 0.0 }
 0x3ec   :  { %v352_v17 = vrot.slane %v351_v16, 4  ;;  %v333_v18 = vpop.permute.xlu0 %332 }
 0x3ed   :  { %v341_v20 = vrot.slane %v333_v18, %v261_v44  ;;  %v350_v21 = vmul.f32 %v346_v15, %v333_v18 }
 0x3ee   :  { %v353_v22 = vadd.f32 %v352_v17, %v351_v16 }
 0x3ef   :  { %v358_v23 = vsel %vm94_vm2, %v350_v21, 0.0  ;;  %v342_v24 = vsel %vm267_vm4, %v341_v20, %v337_v19 }
 0x3f0   :  { %v354_v25 = vrot.slane %v353_v22, 2  ;;  %v359_v26 = vrot.slane %v358_v23, 4  ;;  %344 = vst.msk [vmem:[#allocation9] sm:$0x3] %vm270_vm5, %v342_v24 }
 0x3f1   :  { %507 = shalt.err (!%p504_p6)
}
 0x3f2   :  { %s508_s23 = scalar_lea.hbm %s710_s9, 32 }
 0x3f3   :  { %p509_p7 = scmp.ne.s32.totalorder %s710_s9, %s508_s23  ;;  %p512_p8 = scmp.lt.u32.totalorder %s508_s23, %s710_s9 }
 0x3f5   :  { %p514_p9 = pnand %p512_p8, %p509_p7 }
 0x3f7   :  { %517 = shalt.err (!%p514_p9)
}
 0x3f8   :  { %390 = dma.vmem_to_hbm [thread:$0]  %s388_s7, 32, %s710_s9, [#allocation10]   ;;  %v355_v5 = vadd.f32 %v354_v25, %v353_v22  ;;  %v360_v27 = vadd.f32 %v359_v26, %v358_v23  ;;  %vm369_vm6 = vcmask 254976  }
 0x3f9   :  { %s557_s30 = smov [#allocation8]  }
 0x3fa   :  { %v361_v28 = vrot.slane %v360_v27, 2  ;;  %v356_v29 = vrot.slane %v355_v5, 1  ;;  %s377_s11 = sshll.u32 %s557_s30, 4  ;;  %s378_s11 = int_to_ptr.vmem [resolvable:$true] %s377_s11 }
 0x3fb   :  { %s518_s12 = scalar_lea.vmem %s378_s11, 32  ;;  %p523_p11 = scmp.lt.s32.totalorder %s378_s11, %s378_s11 }
 0x3fc   :  { %v362_v30 = vadd.f32 %v361_v28, %v360_v27  ;;  %v357_v33 = vadd.f32 %v356_v29, %v355_v5  ;;  %p519_p10 = scmp.ne.s32.totalorder %s378_s11, %s518_s12  ;;  %p524_p12 = scmp.lt.s32.totalorder %s518_s12, %s518_s12 }
 0x3fe   :  { %v363_v31 = vrot.slane %v362_v30, 1  ;;  %p525_p13 = por %p524_p12, %p523_p11 }
 0x400   :  { %v364_v32 = vadd.f32 %v363_v31, %v362_v30  ;;  %p526_p0 = pnand %p525_p13, %p519_p10 }
 0x402   :  { %v367_v34 = vsel %vm267_vm4, %v364_v32, %v357_v33 }
 0x403   :  { %370 = vst.msk [vmem:[#allocation8] sm:$0x3] %vm369_vm6, %v367_v34 }
 0x404   :  { %529 = shalt.err (!%p526_p0)
}
 0x405   :  { %s530_s10 = scalar_lea.hbm %s709_s8, 32 }
 0x406   :  { %p531_p1 = scmp.ne.s32.totalorder %s709_s8, %s530_s10  ;;  %p534_p2 = scmp.lt.u32.totalorder %s530_s10, %s709_s8 }
 0x408   :  { %p536_p3 = pnand %p534_p2, %p531_p1 }
 0x40a   :  { %539 = shalt.err (!%p536_p3)
}
 0x40b   :  { %380 = dma.vmem_to_hbm [thread:$0]  %s378_s11, 32, %s709_s8, [#allocation5]  }
 0x40c   :  { %544 = dma.done.wait [#allocation5], 32  }
 0x40d   :  { %545 = vsyncadd [#allocation5], 4294967264 }
 0x40e   :  { %546 = dma.done.wait [#allocation10], 32  }
 0x40f   :  { %547 = vsyncadd [#allocation10], 4294967264 }
 0x410   :  { %397 = vsyncpa [#allocation4], 1 }
 0x411   :  { %398 = vsyncpa [#allocation7], 1 }
 0x412   :  { %399 = vsyncpa [#allocation5], 1 }
 0x413   :  { %400 = vsyncpa [#allocation10], 1 }

</bundles_post_ra>
